<compile_context>
chip_gen: v7x
topology: tpu7x:2x2x1
jax: 0.10.0
libtpu: 0.0.40
codegen_flags: <defaults>
</compile_context>

<pallas_src>
import functools

import jax
import jax.numpy as jnp
from jax.experimental import pallas as pl
from jax.experimental.pallas import tpu as pltpu


def _ipd_kernel(zl_ref, zrt_ref, out_ref, *, tile_n, rhs_resident):
    """out = sigmoid(zl @ zrt_tile) for one (tile_m, tile_n) output tile.

    zl_ref : (tile_m, D) bf16   rows i of z
    zrt_ref: (D, tile_n) bf16   tiled RHS, OR (D, Nc) bf16 fully resident RHS
    out_ref: (tile_m, tile_n) f32 tile of adj
    """
    if rhs_resident:
        j = pl.program_id(1)
        off = pl.multiple_of(j * tile_n, 128)
        rhs = zrt_ref[:, pl.ds(off, tile_n)]
    else:
        rhs = zrt_ref[...]
    logits = jnp.dot(zl_ref[...], rhs, preferred_element_type=jnp.float32)
    # sigmoid(x) == 0.5 * tanh(0.5 x) + 0.5  -- single EUP transcendental.
    out_ref[...] = (0.5 * jnp.tanh(0.5 * logits) + 0.5).astype(out_ref.dtype)


def _round_up(x, m):
    return (x + m - 1) // m * m


# Keep the full (D, N) transposed RHS resident in VMEM when it is at most this
# big (bf16 bytes, per buffer).
_RHS_RESIDENT_BYTES = 4 * 1024 * 1024


@functools.partial(jax.jit, static_argnames=("tile_m", "tile_n"))
def inner_product_decoder(z, *, tile_m=1024, tile_n=1024):
    """adj = sigmoid(z @ z.T); z: (N, D) -> adj: (N, N) float32 (eval mode)."""
    N, D = z.shape

    # bf16 operands feed the MXU at full rate and halve input DMA; the dot
    # accumulates in f32 (preferred_element_type) inside the kernel.
    z_bf = z.astype(jnp.bfloat16)
    zt_bf = z_bf.T  # (D, N): one tiny XLA transpose, no per-tile XLU work.

    # Clamp tiles for small N (no wasted compute/writes) and make sure the
    # leading "parallel" grid axis has >=2 blocks so both v7x TCs get work.
    tile_n = min(tile_n, _round_up(N, 128))
    tile_m = min(tile_m, _round_up(N, 8))
    if N // tile_m < 2 and N > 8:
        tile_m = min(tile_m, _round_up(pl.cdiv(N, 2), 8))

    grid_m = pl.cdiv(N, tile_m)
    grid_n = pl.cdiv(N, tile_n)

    # RHS placement: fully VMEM-resident (constant index map -> DMAed once,
    # sliced per tile in-kernel) when small, else tiled along j.
    n_cols = grid_n * tile_n
    rhs_resident = (D * n_cols * 2) <= _RHS_RESIDENT_BYTES
    if rhs_resident:
        if n_cols != N:
            zt_bf = jnp.pad(zt_bf, ((0, 0), (0, n_cols - N)))
        rhs_spec = pl.BlockSpec((D, n_cols), lambda i, j: (0, 0))
    else:
        rhs_spec = pl.BlockSpec((D, tile_n), lambda i, j: (0, j))

    kernel = functools.partial(_ipd_kernel, tile_n=tile_n, rhs_resident=rhs_resident)

    return pl.pallas_call(
        kernel,
        out_shape=jax.ShapeDtypeStruct((N, N), jnp.float32),
        grid_spec=pltpu.PrefetchScalarGridSpec(
            num_scalar_prefetch=0,
            grid=(grid_m, grid_n),
            in_specs=[
                # (tile_m, D): depends only on i -> re-DMAed only when i changes.
                pl.BlockSpec((tile_m, D), lambda i, j: (i, 0)),
                rhs_spec,
            ],
            out_specs=pl.BlockSpec((tile_m, tile_n), lambda i, j: (i, j)),
        ),
        compiler_params=pltpu.CompilerParams(
            dimension_semantics=("parallel", "parallel"),
            vmem_limit_bytes=32 * 1024 * 1024,
        ),
    )(z_bf, zt_bf)


if __name__ == "__main__":
    key = jax.random.PRNGKey(0)

    # Typical scGNN sizes: (num cells/nodes, latent dim).
    N, D = 256, 64
    z = jax.random.normal(key, (N, D), dtype=jnp.float32)

    adj = jax.block_until_ready(inner_product_decoder(z))
    ref = jax.nn.sigmoid(z @ z.T)
    assert adj.shape == (N, N)
    # bf16 MXU operands vs f32 reference: sigmoid outputs agree to ~1e-2 abs.
    assert jnp.allclose(adj, ref, atol=3e-2), "mismatch vs f32 reference (N=256)"

    # Non-tile-multiple shape: exercises the masked-boundary (cdiv) path.
    N2, D2 = 200, 48
    z2 = jax.random.normal(jax.random.PRNGKey(1), (N2, D2), dtype=jnp.float32)
    adj2 = jax.block_until_ready(inner_product_decoder(z2))
    ref2 = jax.nn.sigmoid(z2 @ z2.T)
    assert adj2.shape == (N2, N2)
    assert jnp.allclose(adj2, ref2, atol=3e-2), "mismatch vs f32 reference (N=200)"

    print("KERNEL_OK")
</pallas_src>

<mosaic_0001>
module attributes {stable_mosaic.version = 11 : i64} {
  func.func @_ipd_kernel(%arg0: i32, %arg1: i32, %arg2: memref<128x64xbf16, #tpu.memory_space<vmem>>, %arg3: memref<64x256xbf16, #tpu.memory_space<vmem>>, %arg4: memref<128x256xf32, #tpu.memory_space<vmem>>) attributes {dimension_semantics = [#tpu.dimension_semantics<parallel>, #tpu.dimension_semantics<parallel>], iteration_bounds = array<i64: 2, 1>, scalar_prefetch = 0 : i64, scratch_operands = 0 : i64, tpu.core_type = #tpu.core_type<tc>, window_params = [{transform_indices = @transform_0, window_bounds = array<i64: 128, 64>}, {pipeline_mode = #tpu.pipeline_mode<synchronous>, transform_indices = @transform_1, window_bounds = array<i64: 64, 256>}, {transform_indices = @transform_2, window_bounds = array<i64: 128, 256>}]} {
    %c256_i32 = arith.constant 256 : i32
    %0 = arith.muli %arg1, %c256_i32 : i32
    %1 = tpu.assume_multiple %0, 128 : i32
    %c0 = arith.constant 0 : index
    %2 = arith.index_cast %1 : i32 to index
    %3 = vector.load %arg3[%c0, %2] : memref<64x256xbf16, #tpu.memory_space<vmem>>, vector<64x256xbf16>
    %c0_0 = arith.constant 0 : index
    %c0_1 = arith.constant 0 : index
    %4 = vector.load %arg2[%c0_0, %c0_1] : memref<128x64xbf16, #tpu.memory_space<vmem>>, vector<128x64xbf16>
    %cst = arith.constant dense<0.000000e+00> : vector<128x256xf32>
    %5 = tpu.matmul %4, %3, %cst {dimension_numbers = #tpu.dot_dimension_numbers<[1], [0], [0], [1], [0, 0, 1, 1], [], []>} : vector<128x64xbf16>, vector<64x256xbf16>, vector<128x256xf32> -> vector<128x256xf32>
    %cst_2 = arith.constant 5.000000e-01 : f32
    %6 = vector.broadcast %cst_2 : f32 to vector<128x256xf32>
    %7 = arith.mulf %6, %5 : vector<128x256xf32>
    %8 = math.tanh %7 : vector<128x256xf32>
    %cst_3 = arith.constant 5.000000e-01 : f32
    %9 = vector.broadcast %cst_3 : f32 to vector<128x256xf32>
    %10 = arith.mulf %9, %8 : vector<128x256xf32>
    %cst_4 = arith.constant 5.000000e-01 : f32
    %11 = vector.broadcast %cst_4 : f32 to vector<128x256xf32>
    %12 = arith.addf %10, %11 : vector<128x256xf32>
    %c0_5 = arith.constant 0 : index
    %c0_6 = arith.constant 0 : index
    %13 = vector.load %arg4[%c0_5, %c0_6] : memref<128x256xf32, #tpu.memory_space<vmem>>, vector<128x256xf32>
    tpu.vector_store %arg4[%c0_5, %c0_6], %12 {strides = array<i32>} : memref<128x256xf32, #tpu.memory_space<vmem>>, vector<128x256xf32>,
    return
  }
  func.func @transform_0(%arg0: i32, %arg1: i32) -> (i32, i32) {
    %c0_i32 = arith.constant 0 : i32
    %c0_i32_0 = arith.constant 0 : i32
    return %arg0, %c0_i32 : i32, i32
  }
  func.func @transform_1(%arg0: i32, %arg1: i32) -> (i32, i32) {
    %c0_i32 = arith.constant 0 : i32
    %c0_i32_0 = arith.constant 0 : i32
    %c0_i32_1 = arith.constant 0 : i32
    return %c0_i32, %c0_i32_0 : i32, i32
  }
  func.func @transform_2(%arg0: i32, %arg1: i32) -> (i32, i32) {
    %c0_i32 = arith.constant 0 : i32
    return %arg0, %arg1 : i32, i32
  }
}

</mosaic_0001>

<bundles_post_ra>
// kernel: inner_product_decoder.1
= control target key start
LH: loop header
LB: loop body
LE: loop exit
PB: predicated region body
PF: predicated region fallthrough
CT: control target
= control target key end

     0   :  { %7 = vsyncpa [#allocation3], 0  ;;  %s1144_s0 = inlined_call_operand.vmem [shape: bf16[256,64], index: 0, kind: input, shape index: {}]   ;;  %s1145_s1 = inlined_call_operand.vmem [shape: bf16[64,256], index: 1, kind: input, shape index: {}]   ;;  %s1146_s2 = inlined_call_operand.hbm [shape: f32[256,256], index: 2, kind: output, shape index: {}]  }
   0x1   :  { %9 = vsyncpa [#allocation3 + $0x1], 0  ;;  %s949_s9 = smov 0   ;;  %s951_s10 = smov 0  }
   0x2   :  { %s953_s11 = smov 0   ;;  %s955_s12 = smov 0  }
   0x3   :  { %s957_s13 = smov 0   ;;  %s959_s14 = smov 0  }
   0x4 LB: > { %s660_s15 = sadd.s32 4294967295, %s928_s14   ;;  %s661_s16 = sadd.s32 4294967294, %s928_s14   ;;  %s928_s14 = sphi %s959_s14, %s15_s14   ;;  %s924_s13 = sphi %s957_s13, %s1153_s13   ;;  %s920_s12 = sphi %s955_s12, %s1152_s12   ;;  %s916_s11 = sphi %s953_s11, %s1151_s11   ;;  %s912_s10 = sphi %s951_s10, %s1150_s10   ;;  %s908_s9 = sphi %s949_s9, %s1149_s9  }
   0x5   : > { %s27_s17 = sadd.s32 1, %s924_s13  ;;  %s83_s18 = sadd.s32 1, %s916_s11 }
   0x6   : > { %p29_p0 = scmp.ge.s32.totalorder %s27_s17, 2  ;;  %p93_p1 = scmp.ne.s32.totalorder %s916_s11, %s912_s10 }
   0x7   : > { %p94_p2 = scmp.eq.s32.totalorder %s660_s15, 1  ;;  %p99_p3 = scmp.ne.s32.totalorder %s912_s10, %s908_s9 }
   0x8   : > { %s1155_s17 = smov (%p29_p0, %s27_s17), 0  ;;  %p100_p5 = scmp.eq.s32.totalorder %s661_s16, 1 }
   0x9   : > { %p989_p4 = por %p94_p2, %p93_p1  ;;  %s78_s20 = ssub.s32 %s924_s13, %s1155_s17 }
   0xa   : > { %p664_p6 = scmp.ge.s32.totalorder %s928_s14, 1  ;;  %p81_p7 = scmp.eq.s32.totalorder %s78_s20, 0 }
   0xb   : > { %p996_p8 = por %p100_p5, %p99_p3  ;;  %p130_p9 = scmp.lt.s32.totalorder %s928_s14, 3 }
   0xc   : > { %s1002_s22 = scalar_select %p81_p7, %s916_s11, %s83_s18  }
   0xd   : > { %p131_p10 = pnand %p664_p6, %p130_p9 }
   0xe   : > { %v766_v0 = vld [vmem:[%s1145_s1 + $0x4] ss:$8 sps:$4 sm:$0xff] (!%p131_p10)   ;;  %s666_s25 = sshll.u32 (!%p131_p10), %s920_s12, 4  ;;  %v768_v1 = vld [vmem:[%s1145_s1] ss:$8 sps:$4 sm:$0xff] (!%p131_p10)   ;;  %v930_v2 = vmov (!%p131_p10), 0  }
   0xf   : > { %134 = sbr.rel (%p131_p10) target bundleno = 310 (0x136), region = 28  ;;  %327 = vmatprep.mubr.bf16.mxu0 (!%p131_p10), %v930_v2  ;;  %367 = vmatprep.mubr.bf16.mxu1 (!%p131_p10), %v930_v2  ;;  %p153_p11 = scmp.lt.s32.totalorder (!%p131_p10), %s666_s25, 31  ;;  %v769_v3 = vld [vmem:[%s1145_s1 + $0x14] ss:$8 sps:$4 sm:$0xff] (!%p131_p10)   ;;  %v771_v4 = vld [vmem:[%s1145_s1 + $0x10] ss:$8 sps:$4 sm:$0xff] (!%p131_p10)  }
  0x10   : > { %295 = vmatprep.subr.bf16.mxu0 (!%p131_p10), %v766_v0  ;;  %700 = vmatprep.subr.bf16.mxu1 (!%p131_p10), %v766_v0  ;;  %v772_v5 = vld [vmem:[%s1145_s1 + $0x24] ss:$8 sps:$4 sm:$0xff] (!%p131_p10)   ;;  %v774_v6 = vld [vmem:[%s1145_s1 + $0x20] ss:$8 sps:$4 sm:$0xff] (!%p131_p10)   ;;  %v775_v7 = vld [vmem:[%s1145_s1 + $0x34] ss:$8 sps:$4 sm:$0xff] (!%p131_p10)  }
  0x11   : > { %296 = vmatpush1.bf16.msra.mxu0 (!%p131_p10), %v768_v1  ;;  %704 = vmatpush1.bf16.msra.mxu1 (!%p131_p10), %v768_v1  ;;  %v777_v8 = vld [vmem:[%s1145_s1 + $0x30] ss:$8 sps:$4 sm:$0xff] (!%p131_p10)   ;;  %vm270_vm0 = vcmask (!%p131_p10), 523264   ;;  %s149_s26 = sand.u32 (!%p131_p10), 1, %s912_s10   ;;  %s699_s29 = sshll.u32 (!%p131_p10), %s920_s12, 12 }
  0x12   : > { %297 = vmatprep.subr.bf16.mxu0 (!%p131_p10), %v769_v3  ;;  %701 = vmatprep.subr.bf16.mxu1 (!%p131_p10), %v769_v3  ;;  %s665_s27 = sshll.u32 (!%p131_p10), %s149_s26, 8  ;;  %s1089_s5 = scalar_lea.hbm (!%p131_p10), %s1146_s2, %s699_s29 }
  0x13   : > { %s1053_s28 = scalar_lea.vmem (!%p131_p10), [#allocation2], %s665_s27  ;;  %s1098_s12 = scalar_lea.sflag (!%p131_p10), [#allocation3], %s149_s26 }
  0x14   : > { %s585_s30 = sshll.u32 (!%p131_p10), %s1053_s28, 4  ;;  %s931_s7 = smov (!%p131_p10), [#allocation2]   ;;  %s1091_s30 = int_to_ptr.vmem [resolvable:$true] %s585_s30 }
  0x15   : > { %298 = vmatpush1.bf16.msra.mxu0 (!%p131_p10), %v771_v4  ;;  %705 = vmatpush1.bf16.msra.mxu1 (!%p131_p10), %v771_v4  ;;  %s854_s8 = sshll.u32 (!%p131_p10), %s931_s7, 4  ;;  %s855_s8 = int_to_ptr.vmem [resolvable:$false] %s854_s8 }
  0x16   : > { %s1157_s25 = smov (!%p153_p11, %s666_s25), 31  ;;  %299 = vmatprep.subr.bf16.mxu0 %v772_v5  ;;  %702 = vmatprep.subr.bf16.mxu1 %v772_v5  ;;  %p857_p1 = scmp.lt.s32.totalorder %s1091_s30, %s855_s8 }
  0x17   : > { %s667_s6 = sshll.u32 %s1157_s25, 2 }
  0x18   : > { %s1023_s15 = scalar_lea.vmem %s1144_s0, %s667_s6  ;;  %s850_s6 = scalar_lea.vmem %s1091_s30, 4096 }
  0x19   : > { %300 = vmatpush1.bf16.msra.mxu0 %v774_v6  ;;  %706 = vmatpush1.bf16.msra.mxu1 %v774_v6  ;;  %v778_v9 = vld [vmem:[%s1023_s15] sm:$0xff]   ;;  %v780_v11 = vld [vmem:[%s1023_s15 + $0x8] sm:$0xff]   ;;  %v782_v13 = vld [vmem:[%s1023_s15 + $0x10] sm:$0xff]   ;;  %p851_p12 = scmp.ne.s32.totalorder %s1091_s30, %s850_s6 }
  0x1a   : > { %301 = vmatprep.subr.bf16.mxu0 %v775_v7  ;;  %703 = vmatprep.subr.bf16.mxu1 %v775_v7  ;;  %v779_v10 = vld [vmem:[%s1023_s15 + $0x20] sm:$0xff]   ;;  %v781_v12 = vld [vmem:[%s1023_s15 + $0x28] sm:$0xff]   ;;  %v783_v14 = vld [vmem:[%s1023_s15 + $0x30] sm:$0xff]  }
  0x1b   : > { %v784_v15 = vld [vmem:[%s1023_s15 + $0x18] sm:$0xff]   ;;  %p852_p13 = pnand %p851_p12, %p989_p4 }
  0x1c   : > { %v785_v16 = vld [vmem:[%s1023_s15 + $0x38] sm:$0xff]   ;;  %s856_s15 = scalar_lea.vmem %s855_s8, 8192 }
  0x1d   : > { %302 = vmatpush1.bf16.msra.mxu0 %v777_v8  ;;  %707 = vmatpush1.bf16.msra.mxu1 %v777_v8  ;;  %p853_p0 = pneg %p852_p13  ;;  %p858_p2 = scmp.lt.s32.totalorder %s856_s15, %s850_s6 }
  0x1f   : > { %p859_p3 = por %p858_p2, %p857_p1 }
  0x20   : > { %684 = vmatmul.mubr.msk.bf16.vlgmr.msra.gmra.mrb[0].mxu0 %vm270_vm0, %v778_v9  ;;  %688 = vmatmul.mubr.msk.bf16.vlgmr.msra.gmra.mrb[0].mxu1 %vm270_vm0, %v779_v10 }
  0x21   : > { %337 = vmatprep.mubr.bf16.mxu0 %v930_v2  ;;  %377 = vmatprep.mubr.bf16.mxu1 %v930_v2  ;;  %p860_p5 = pnand %p859_p3, %p853_p0 }
  0x28   : > { %685 = vmatmul.mubr.msk.bf16.gmra.mrb[4].mxu0 %vm270_vm0, %v780_v11  ;;  %689 = vmatmul.mubr.msk.bf16.gmra.mrb[4].mxu1 %vm270_vm0, %v781_v12 }
  0x29   : > { %347 = vmatprep.mubr.bf16.mxu0 %v930_v2  ;;  %387 = vmatprep.mubr.bf16.mxu1 %v930_v2 }
  0x30   : > { %686 = vmatmul.mubr.msk.bf16.gmra.mrb[8].mxu0 %vm270_vm0, %v782_v13  ;;  %690 = vmatmul.mubr.msk.bf16.gmra.mrb[8].mxu1 %vm270_vm0, %v783_v14 }
  0x31   : > { %357 = vmatprep.mubr.bf16.mxu0 %v930_v2  ;;  %397 = vmatprep.mubr.bf16.mxu1 %v930_v2 }
  0x38   : > { %687 = vmatmul.mubr.msk.bf16.gmra.mrb[12].mxu0 %vm270_vm0, %v784_v15  ;;  %691 = vmatmul.mubr.msk.bf16.gmra.mrb[12].mxu1 %vm270_vm0, %v785_v16 }
  0xf3   : > { %v329_v17 = vpop.f32.mrb[0].mxu0  ;;  %v369_v18 = vpop.f32.mrb[0].mxu1 }
  0xf4   : > { %v408_v19 = vmul.f32 0.5, %v329_v17  ;;  %v424_v20 = vmul.f32 0.5, %v369_v18  ;;  %v331_v21 = vpop.f32.mrb[1].mxu0  ;;  %v371_v22 = vpop.f32.mrb[1].mxu1 }
  0xf5   : > { %v409_v23 = vmul.f32 0.5, %v331_v21  ;;  %v425_v24 = vmul.f32 0.5, %v371_v22  ;;  %v333_v25 = vpop.f32.mrb[2].mxu0  ;;  %v373_v26 = vpop.f32.mrb[2].mxu1 }
  0xf6   : > { %786 = vtanh.f32 %v408_v19  ;;  %v410_v27 = vmul.f32 0.5, %v333_v25  ;;  %v335_v28 = vpop.f32.mrb[3].mxu0  ;;  %v375_v29 = vpop.f32.mrb[3].mxu1  ;;  %v426_v30 = vmul.f32 0.5, %v373_v26 }
  0xf7   : > { %788 = vtanh.f32 %v424_v20  ;;  %v411_v31 = vmul.f32 0.5, %v335_v28  ;;  %v427_v32 = vmul.f32 0.5, %v375_v29 }
  0xf8   : > { %790 = vtanh.f32 %v409_v23 }
  0xf9   : > { %792 = vtanh.f32 %v425_v24 }
  0xfa   : > { %794 = vtanh.f32 %v410_v27 }
  0xfb   : > { %796 = vtanh.f32 %v426_v30  ;;  %v339_v33 = vpop.f32.mrb[4].mxu0  ;;  %v379_v34 = vpop.f32.mrb[4].mxu1 }
  0xfc   : > { %798 = vtanh.f32 %v411_v31  ;;  %v412_v35 = vmul.f32 0.5, %v339_v33  ;;  %v428_v36 = vmul.f32 0.5, %v379_v34  ;;  %v341_v37 = vpop.f32.mrb[5].mxu0  ;;  %v381_v38 = vpop.f32.mrb[5].mxu1 }
  0xfd   : > { %800 = vtanh.f32 %v427_v32  ;;  %v413_v39 = vmul.f32 0.5, %v341_v37  ;;  %v429_v40 = vmul.f32 0.5, %v381_v38  ;;  %v343_v41 = vpop.f32.mrb[6].mxu0  ;;  %v383_v42 = vpop.f32.mrb[6].mxu1 }
  0xfe   : > { %802 = vtanh.f32 %v412_v35  ;;  %v414_v43 = vmul.f32 0.5, %v343_v41  ;;  %v345_v44 = vpop.f32.mrb[7].mxu0  ;;  %v385_v45 = vpop.f32.mrb[7].mxu1  ;;  %v430_v46 = vmul.f32 0.5, %v383_v42 }
  0xff   : > { %804 = vtanh.f32 %v428_v36  ;;  %v415_v48 = vmul.f32 0.5, %v345_v44  ;;  %v431_v51 = vmul.f32 0.5, %v385_v45 }
 0x100   : > { %v787_v47 = vpop.eup %786  ;;  %806 = vtanh.f32 %v413_v39 }
 0x101   : > { %v789_v49 = vpop.eup %788  ;;  %v472_v50 = vmul.f32 0.5, %v787_v47  ;;  %808 = vtanh.f32 %v429_v40 }
 0x102   : > { %v791_v52 = vpop.eup %790  ;;  %v488_v53 = vmul.f32 0.5, %v789_v49  ;;  %810 = vtanh.f32 %v414_v43 }
 0x103   : > { %v793_v54 = vpop.eup %792  ;;  %v504_v55 = vadd.f32 0.5, %v472_v50  ;;  %v473_v56 = vmul.f32 0.5, %v791_v52  ;;  %812 = vtanh.f32 %v430_v46  ;;  %v349_v57 = vpop.f32.mrb[8].mxu0 }
 0x104   : > { %v389_v58 = vpop.f32.mrb[8].mxu1  ;;  %v795_v59 = vpop.eup %794  ;;  %v520_v60 = vadd.f32 0.5, %v488_v53  ;;  %v489_v61 = vmul.f32 0.5, %v793_v54  ;;  %814 = vtanh.f32 %v415_v48  ;;  %v416_v62 = vmul.f32 0.5, %v349_v57 }
 0x105   : > { %v351_v63 = vpop.f32.mrb[9].mxu0  ;;  %v391_v0 = vpop.f32.mrb[9].mxu1  ;;  %536 = vst [vmem:[%s1053_s28] sm:$0xff] %v504_v55  ;;  %v505_v2 = vadd.f32 0.5, %v473_v56  ;;  %v474_v3 = vmul.f32 0.5, %v795_v59  ;;  %816 = vtanh.f32 %v431_v51  ;;  %v432_v4 = vmul.f32 0.5, %v389_v58 }
 0x106   : > { %v797_v1 = vpop.eup %796  ;;  %v353_v5 = vpop.f32.mrb[10].mxu0  ;;  %552 = vst [vmem:[%s1053_s28 + $0x80] sm:$0xff] %v520_v60  ;;  %v521_v8 = vadd.f32 0.5, %v489_v61  ;;  %818 = vtanh.f32 %v416_v62  ;;  %v417_v10 = vmul.f32 0.5, %v351_v63  ;;  %v433_v16 = vmul.f32 0.5, %v391_v0 }
 0x107   : > { %v393_v6 = vpop.f32.mrb[10].mxu1  ;;  %v799_v7 = vpop.eup %798  ;;  %v490_v9 = vmul.f32 0.5, %v797_v1  ;;  %537 = vst [vmem:[%s1053_s28 + $0x8] sm:$0xff] %v505_v2  ;;  %v506_v14 = vadd.f32 0.5, %v474_v3  ;;  %820 = vtanh.f32 %v432_v4  ;;  %v418_v20 = vmul.f32 0.5, %v353_v5 }
 0x108   : > { %v355_v11 = vpop.f32.mrb[11].mxu0  ;;  %v395_v12 = vpop.f32.mrb[11].mxu1  ;;  %v475_v15 = vmul.f32 0.5, %v799_v7  ;;  %553 = vst [vmem:[%s1053_s28 + $0x88] sm:$0xff] %v521_v8  ;;  %822 = vtanh.f32 %v417_v10  ;;  %v434_v24 = vmul.f32 0.5, %v393_v6 }
 0x109   : > { %v801_v13 = vpop.eup %800  ;;  %v522_v18 = vadd.f32 0.5, %v490_v9  ;;  %538 = vst [vmem:[%s1053_s28 + $0x10] sm:$0xff] %v506_v14  ;;  %824 = vtanh.f32 %v433_v16  ;;  %v419_v28 = vmul.f32 0.5, %v355_v11  ;;  %v435_v32 = vmul.f32 0.5, %v395_v12 }
 0x10a   : > { %v803_v17 = vpop.eup %802  ;;  %v491_v19 = vmul.f32 0.5, %v801_v13  ;;  %v507_v22 = vadd.f32 0.5, %v475_v15  ;;  %826 = vtanh.f32 %v418_v20 }
 0x10b   : > { %v805_v21 = vpop.eup %804  ;;  %v476_v23 = vmul.f32 0.5, %v803_v17  ;;  %554 = vst [vmem:[%s1053_s28 + $0x90] sm:$0xff] %v522_v18  ;;  %828 = vtanh.f32 %v434_v24  ;;  %v359_v33 = vpop.f32.mrb[12].mxu0 }
 0x10c   : > { %v807_v25 = vpop.eup %806  ;;  %v523_v26 = vadd.f32 0.5, %v491_v19  ;;  %v492_v27 = vmul.f32 0.5, %v805_v21  ;;  %539 = vst [vmem:[%s1053_s28 + $0x18] sm:$0xff] %v507_v22  ;;  %v399_v34 = vpop.f32.mrb[12].mxu1  ;;  %830 = vtanh.f32 %v419_v28  ;;  %v420_v38 = vmul.f32 0.5, %v359_v33 }
 0x10d   : > { %v809_v29 = vpop.eup %808  ;;  %v508_v30 = vadd.f32 0.5, %v476_v23  ;;  %v477_v31 = vmul.f32 0.5, %v807_v25  ;;  %v361_v39 = vpop.f32.mrb[13].mxu0  ;;  %832 = vtanh.f32 %v435_v32  ;;  %v436_v44 = vmul.f32 0.5, %v399_v34 }
 0x10e   : > { %v811_v35 = vpop.eup %810  ;;  %555 = vst [vmem:[%s1053_s28 + $0x98] sm:$0xff] %v523_v26  ;;  %v524_v36 = vadd.f32 0.5, %v492_v27  ;;  %v493_v37 = vmul.f32 0.5, %v809_v29  ;;  %v401_v40 = vpop.f32.mrb[13].mxu1  ;;  %834 = vtanh.f32 %v420_v38  ;;  %v421_v50 = vmul.f32 0.5, %v361_v39 }
 0x10f   : > { %v813_v41 = vpop.eup %812  ;;  %540 = vst [vmem:[%s1053_s28 + $0x20] sm:$0xff] %v508_v30  ;;  %v509_v42 = vadd.f32 0.5, %v477_v31  ;;  %v478_v43 = vmul.f32 0.5, %v811_v35  ;;  %v363_v45 = vpop.f32.mrb[14].mxu0  ;;  %836 = vtanh.f32 %v436_v44  ;;  %v437_v56 = vmul.f32 0.5, %v401_v40 }
 0x110   : > { %v403_v46 = vpop.f32.mrb[14].mxu1  ;;  %v815_v47 = vpop.eup %814  ;;  %556 = vst [vmem:[%s1053_s28 + $0xa0] sm:$0xff] %v524_v36  ;;  %v525_v48 = vadd.f32 0.5, %v493_v37  ;;  %v494_v49 = vmul.f32 0.5, %v813_v41  ;;  %838 = vtanh.f32 %v421_v50  ;;  %v422_v60 = vmul.f32 0.5, %v363_v45 }
 0x111   : > { %v365_v51 = vpop.f32.mrb[15].mxu0  ;;  %v405_v52 = vpop.f32.mrb[15].mxu1  ;;  %541 = vst [vmem:[%s1053_s28 + $0x28] sm:$0xff] %v509_v42  ;;  %v510_v54 = vadd.f32 0.5, %v478_v43  ;;  %v479_v55 = vmul.f32 0.5, %v815_v47  ;;  %840 = vtanh.f32 %v437_v56  ;;  %v438_v0 = vmul.f32 0.5, %v403_v46 }
 0x112   : > { %v817_v53 = vpop.eup %816  ;;  %557 = vst [vmem:[%s1053_s28 + $0xa8] sm:$0xff] %v525_v48  ;;  %v526_v58 = vadd.f32 0.5, %v494_v49  ;;  %842 = vtanh.f32 %v422_v60  ;;  %v423_v4 = vmul.f32 0.5, %v365_v51  ;;  %v439_v8 = vmul.f32 0.5, %v405_v52 }
 0x113   : > { %v819_v57 = vpop.eup %818  ;;  %v495_v59 = vmul.f32 0.5, %v817_v53  ;;  %542 = vst [vmem:[%s1053_s28 + $0x30] sm:$0xff] %v510_v54  ;;  %v511_v62 = vadd.f32 0.5, %v479_v55  ;;  %844 = vtanh.f32 %v438_v0 }
 0x114   : > { %v821_v61 = vpop.eup %820  ;;  %v480_v63 = vmul.f32 0.5, %v819_v57  ;;  %558 = vst [vmem:[%s1053_s28 + $0xb0] sm:$0xff] %v526_v58  ;;  %846 = vtanh.f32 %v423_v4 }
 0x115   : > { %v823_v1 = vpop.eup %822  ;;  %v527_v2 = vadd.f32 0.5, %v495_v59  ;;  %v496_v3 = vmul.f32 0.5, %v821_v61  ;;  %543 = vst [vmem:[%s1053_s28 + $0x38] sm:$0xff] %v511_v62  ;;  %848 = vtanh.f32 %v439_v8 }
 0x116   : > { %v825_v5 = vpop.eup %824  ;;  %v512_v6 = vadd.f32 0.5, %v480_v63  ;;  %v481_v7 = vmul.f32 0.5, %v823_v1 }
 0x117   : > { %v827_v9 = vpop.eup %826  ;;  %559 = vst [vmem:[%s1053_s28 + $0xb8] sm:$0xff] %v527_v2  ;;  %v528_v10 = vadd.f32 0.5, %v496_v3  ;;  %v497_v11 = vmul.f32 0.5, %v825_v5 }
 0x118   : > { %v829_v12 = vpop.eup %828  ;;  %544 = vst [vmem:[%s1053_s28 + $0x40] sm:$0xff] %v512_v6  ;;  %v513_v13 = vadd.f32 0.5, %v481_v7  ;;  %v482_v14 = vmul.f32 0.5, %v827_v9 }
 0x119   : > { %v831_v15 = vpop.eup %830  ;;  %560 = vst [vmem:[%s1053_s28 + $0xc0] sm:$0xff] %v528_v10  ;;  %v529_v16 = vadd.f32 0.5, %v497_v11  ;;  %v498_v17 = vmul.f32 0.5, %v829_v12 }
 0x11a   : > { %v833_v18 = vpop.eup %832  ;;  %545 = vst [vmem:[%s1053_s28 + $0x48] sm:$0xff] %v513_v13  ;;  %v514_v19 = vadd.f32 0.5, %v482_v14  ;;  %v483_v20 = vmul.f32 0.5, %v831_v15 }
 0x11b   : > { %v835_v21 = vpop.eup %834  ;;  %561 = vst [vmem:[%s1053_s28 + $0xc8] sm:$0xff] %v529_v16  ;;  %v530_v22 = vadd.f32 0.5, %v498_v17  ;;  %v499_v23 = vmul.f32 0.5, %v833_v18 }
 0x11c   : > { %v837_v24 = vpop.eup %836  ;;  %546 = vst [vmem:[%s1053_s28 + $0x50] sm:$0xff] %v514_v19  ;;  %v515_v25 = vadd.f32 0.5, %v483_v20  ;;  %v484_v26 = vmul.f32 0.5, %v835_v21 }
 0x11d   : > { %v839_v27 = vpop.eup %838  ;;  %562 = vst [vmem:[%s1053_s28 + $0xd0] sm:$0xff] %v530_v22  ;;  %v531_v28 = vadd.f32 0.5, %v499_v23  ;;  %v500_v29 = vmul.f32 0.5, %v837_v24 }
 0x11e   : > { %v841_v30 = vpop.eup %840  ;;  %547 = vst [vmem:[%s1053_s28 + $0x58] sm:$0xff] %v515_v25  ;;  %v516_v31 = vadd.f32 0.5, %v484_v26  ;;  %v485_v32 = vmul.f32 0.5, %v839_v27 }
 0x11f   : > { %v843_v33 = vpop.eup %842  ;;  %563 = vst [vmem:[%s1053_s28 + $0xd8] sm:$0xff] %v531_v28  ;;  %v532_v34 = vadd.f32 0.5, %v500_v29  ;;  %v501_v35 = vmul.f32 0.5, %v841_v30 }
 0x120   : > { %v845_v36 = vpop.eup %844  ;;  %548 = vst [vmem:[%s1053_s28 + $0x60] sm:$0xff] %v516_v31  ;;  %v517_v37 = vadd.f32 0.5, %v485_v32  ;;  %v486_v38 = vmul.f32 0.5, %v843_v33 }
 0x121   : > { %v847_v39 = vpop.eup %846  ;;  %564 = vst [vmem:[%s1053_s28 + $0xe0] sm:$0xff] %v532_v34  ;;  %v533_v40 = vadd.f32 0.5, %v501_v35  ;;  %v502_v41 = vmul.f32 0.5, %v845_v36 }
 0x122   : > { %v849_v42 = vpop.eup %848  ;;  %549 = vst [vmem:[%s1053_s28 + $0x68] sm:$0xff] %v517_v37  ;;  %v518_v43 = vadd.f32 0.5, %v486_v38  ;;  %v487_v44 = vmul.f32 0.5, %v847_v39 }
 0x123   : > { %565 = vst [vmem:[%s1053_s28 + $0xe8] sm:$0xff] %v533_v40  ;;  %v534_v45 = vadd.f32 0.5, %v502_v41  ;;  %v503_v46 = vmul.f32 0.5, %v849_v42 }
 0x124   : > { %550 = vst [vmem:[%s1053_s28 + $0x70] sm:$0xff] %v518_v43  ;;  %v519_v47 = vadd.f32 0.5, %v487_v44 }
 0x125   : > { %566 = vst [vmem:[%s1053_s28 + $0xf0] sm:$0xff] %v534_v45  ;;  %v535_v48 = vadd.f32 0.5, %v503_v46 }
 0x126   : > { %551 = vst [vmem:[%s1053_s28 + $0x78] sm:$0xff] %v519_v47 }
 0x127   : > { %567 = vst [vmem:[%s1053_s28 + $0xf8] sm:$0xff] %v535_v48 }
 0x128   : > { %863 = shalt.err (!%p860_p5)
}
 0x129   : > { %s864_s16 = scalar_lea.hbm %s1089_s5, 4096  ;;  %s868_s23 = scalar_lea.hbm %s1146_s2, 8192 }
 0x12a   : > { %p865_p6 = scmp.ne.s32.totalorder %s1089_s5, %s864_s16  ;;  %p869_p10 = scmp.lt.u32.totalorder %s1089_s5, %s1146_s2 }
 0x12b   : > { %p870_p11 = scmp.lt.u32.totalorder %s868_s23, %s864_s16  ;;  %p872_p13 = scmp.lt.u32.totalorder %s864_s16, %s1089_s5 }
 0x12c   : > { %p866_p7 = pnand %p865_p6, %p989_p4 }
 0x12d   : > { %p871_p12 = por %p870_p11, %p869_p10 }
 0x12e   : > { %p867_p9 = pneg %p866_p7 }
 0x12f   : > { %p873_p0 = por %p872_p13, %p871_p12 }
 0x131   : > { %p874_p1 = pnand %p873_p0, %p867_p9 }
 0x133   : > { %877 = shalt.err (!%p874_p1)
}
 0x134   : > { %s932_s26 = smov 256   ;;  %s933_s27 = smov 16  }
 0x135   : > { %708 = dma.vmem_to_hbm [thread:$0]  (%p989_p4), %s1091_s30, 4096, %s1089_s5, %s1098_s12, %s932_s26, %s932_s26, %s933_s27  }
 0x136 PF: > { %p714_p2 = scmp.ge.s32.totalorder %s928_s14, 2  ;;  %s600_s28 = sand.u32 1, %s908_s9  }
 0x137   : > { %s601_s29 = scalar_lea.sflag [#allocation3], %s600_s28 }
 0x138   : > { %p711_p3 = pnand %p714_p2, %p996_p8 }
 0x13a   : > { %903 = dma.done.wait (!%p711_p3), %s601_s29, 4096  }
 0x13b   : > { %905 = vsyncadd (!%p711_p3), %s601_s29, 4294963200  ;;  %s15_s14 = sadd.s32 1, %s928_s14   ;;  %s1149_s9 = smov %s912_s10 }
 0x13c   : > { %p12_p5 = scmp.ge.s32.totalorder %s15_s14, 4   ;;  %s1150_s10 = smov %s916_s11 }
 0x13d   : > { %s1151_s11 = smov %s1002_s22  ;;  %s1152_s12 = smov %s924_s13 }
 0x13e   : > { %s1153_s13 = smov %s1155_s17  ;;  %14 = sbr.rel (!%p12_p5) target bundleno = 4 (0x4), region = 64 }
 0x145   :  { %606 = vsyncpa [#allocation3], 1 }
 0x146   :  { %608 = vsyncpa [#allocation3 + $0x1], 1 }

</bundles_post_ra>
